<compile_context>
chip_gen: v7x
topology: tpu7x:2x2x1
jax: 0.10.0
libtpu: 0.0.40
codegen_flags: <defaults>
</compile_context>

<pallas_src>
import functools

import jax
import jax.numpy as jnp
from jax.experimental import pallas as pl
from jax.experimental.pallas import tpu as pltpu


# ----------------------------------------------------------------------------- helpers

def _sublane_multiple(dtype) -> int:
    return {4: 8, 2: 16, 1: 32}.get(jnp.dtype(dtype).itemsize, 8)


# ----------------------------------------------------------------------------- kernel

def _gaussian_kl_kernel(mu1_ref, lv1_ref, mu2_ref, lv2_ref, out_ref, acc_ref,
                        *, true_b, true_d, tb, td, mask_rows, mask_cols):
    """Fused Gaussian KL partial-sum kernel.

    mu1/lv1/mu2/lv2 refs : (tb, td) tile of each input (native dtype)
    out_ref              : (tb, 1)  per-row partial sums for this batch tile
    acc_ref              : (tb, td) f32 VMEM scratch (elementwise accumulator)
    """
    i = pl.program_id(0)   # batch tile   ("parallel")
    j = pl.program_id(1)   # feature tile ("arbitrary", reduction, innermost)

    @pl.when(j == 0)
    def _init():
        acc_ref[...] = jnp.zeros_like(acc_ref)

    # Cast in-kernel so bf16 inputs stream through HBM at native width.
    mu1 = mu1_ref[...].astype(jnp.float32)
    lv1 = lv1_ref[...].astype(jnp.float32)
    mu2 = mu2_ref[...].astype(jnp.float32)
    lv2 = lv2_ref[...].astype(jnp.float32)

    diff = mu1 - mu2
    # (exp(lv1) + diff^2) * exp(-lv2)  ==  (exp(lv1) + diff^2) / exp(lv2)
    # -> two EUP exps + VPU mul instead of an EUP exp + vector divide.
    fraction = (jnp.exp(lv1) + diff * diff) * jnp.exp(-lv2)
    term = lv2 - lv1 + fraction - 1.0                       # (tb, td) f32

    # Mask rows/cols that fall outside the true (B, D) extent (partial edge
    # tiles). Flags are static Python bools -> no cost when not needed.
    if mask_rows or mask_cols:
        mask = None
        if mask_rows:
            row = jax.lax.broadcasted_iota(jnp.int32, (tb, td), 0) + i * tb
            mask = row < true_b
        if mask_cols:
            col = jax.lax.broadcasted_iota(jnp.int32, (tb, td), 1) + j * td
            cmask = col < true_d
            mask = cmask if mask is None else (mask & cmask)
        term = jnp.where(mask, term, 0.0)

    acc_ref[...] += term                                    # pure VPU accumulate

    @pl.when(j == pl.num_programs(1) - 1)
    def _finalize():
        # Single cross-lane reduction per batch tile (epilogue only).
        out_ref[...] = jnp.sum(acc_ref[...], axis=1, keepdims=True)


# ----------------------------------------------------------------------------- wrapper

def gaussian_kl_loss(mu1, logvar1, mu2, logvar2):
    """mu1, logvar1, mu2, logvar2: (B, D) arrays -> scalar float32 KL loss."""
    assert mu1.shape == logvar1.shape == mu2.shape == logvar2.shape
    B, D = mu1.shape

    dtype = jnp.result_type(mu1.dtype, logvar1.dtype, mu2.dtype, logvar2.dtype)
    mu1, logvar1, mu2, logvar2 = (x.astype(dtype) for x in (mu1, logvar1, mu2, logvar2))
    itemsize = jnp.dtype(dtype).itemsize
    sub = _sublane_multiple(dtype)

    # ---- tile selection: lane-dense feature tile, ~1 MiB (f32) per input block.
    if D < 128:
        td = D                                   # full feature dim (always legal)
    else:
        td = min(1024, (D // 128) * 128)         # multiple of 128 lanes
    target_rows = max(sub, ((1 << 20) // (td * 4)) // sub * sub)
    tb = B if B <= target_rows else target_rows  # tb == B or a sublane multiple

    nb = (B + tb - 1) // tb
    nf = (D + td - 1) // td
    mask_rows = nb * tb > B
    mask_cols = nf * td > D

    kernel = functools.partial(
        _gaussian_kl_kernel,
        true_b=B, true_d=D, tb=tb, td=td,
        mask_rows=mask_rows, mask_cols=mask_cols)

    in_spec = pl.BlockSpec((tb, td), lambda i, j: (i, j))
    out_spec = pl.BlockSpec((tb, 1), lambda i, j: (i, 0))

    # VMEM budget: 4 inputs x 2 pipeline buffers + f32 accumulator (+ slack).
    vmem_need = 4 * 2 * tb * td * itemsize + tb * td * 4 + 4 * tb + (1 << 15)
    vmem_limit = int(min(max(2 * vmem_need, 16 << 20), 48 << 20))

    cost = pl.CostEstimate(
        flops=8 * B * D,
        transcendentals=2 * B * D,
        bytes_accessed=4 * B * D * itemsize + nb * tb * 4,
    )

    partials = pl.pallas_call(
        kernel,
        out_shape=jax.ShapeDtypeStruct((nb * tb, 1), jnp.float32),
        grid_spec=pltpu.PrefetchScalarGridSpec(
            num_scalar_prefetch=0,
            grid=(nb, nf),
            in_specs=[in_spec, in_spec, in_spec, in_spec],
            out_specs=out_spec,
            scratch_shapes=[pltpu.VMEM((tb, td), jnp.float32)],
        ),
        compiler_params=pltpu.CompilerParams(
            dimension_semantics=("parallel", "arbitrary"),
            vmem_limit_bytes=vmem_limit,
        ),
        cost_estimate=cost,
    )(mu1, logvar1, mu2, logvar2)

    # Masked (padded) rows contributed exactly 0; divisor is the true B.
    return 0.5 * jnp.sum(partials) / B


# ----------------------------------------------------------------------------- reference

def gaussian_kl_loss_ref(mu1, logvar1, mu2, logvar2):
    """Pure-JAX transcription of the PyTorch forward (f32 math, for validation)."""
    mu1, logvar1, mu2, logvar2 = (x.astype(jnp.float32)
                                  for x in (mu1, logvar1, mu2, logvar2))
    numerator = jnp.exp(logvar1) + jnp.square(mu1 - mu2)
    fraction = numerator / jnp.exp(logvar2)
    kl = 0.5 * jnp.sum(logvar2 - logvar1 + fraction - 1.0, axis=1)
    return jnp.mean(kl, axis=0)


# ----------------------------------------------------------------------------- main

if __name__ == "__main__":
    key = jax.random.PRNGKey(0)

    def make_inputs(B, D, dtype):
        k1, k2, k3, k4 = jax.random.split(jax.random.fold_in(key, B * 131 + D), 4)
        mu1 = jax.random.normal(k1, (B, D), jnp.float32).astype(dtype)
        lv1 = (0.5 * jax.random.normal(k2, (B, D), jnp.float32)).astype(dtype)
        mu2 = jax.random.normal(k3, (B, D), jnp.float32).astype(dtype)
        lv2 = (0.5 * jax.random.normal(k4, (B, D), jnp.float32)).astype(dtype)
        return mu1, lv1, mu2, lv2

    def check(B, D, dtype):
        args = make_inputs(B, D, dtype)
        out = jax.block_until_ready(gaussian_kl_loss(*args))
        ref = jax.block_until_ready(gaussian_kl_loss_ref(*args))
        assert out.shape == ()
        assert bool(jnp.isfinite(out))
        assert bool(jnp.allclose(out, ref, rtol=1e-4, atol=1e-4)), (B, D, dtype, out, ref)

    # Main case: B fills the sublanes, D is a multiple of 128 lanes.
    check(8, 256, jnp.float32)
    # Ragged feature dim (< 128): single full-width feature block.
    check(8, 96, jnp.float32)
    # Ragged B and D with multiple batch/feature tiles -> exercises both masks.
    check(200, 300, jnp.float32)
    # Native bf16 inputs: DMA'd at half width, cast to f32 inside the kernel.
    check(8, 256, jnp.bfloat16)

    print("KERNEL_OK")
</pallas_src>

<mosaic_0001>
module attributes {stable_mosaic.version = 11 : i64} {
  func.func @_gaussian_kl_kernel(%arg0: i32, %arg1: i32, %arg2: memref<8x256xf32, #tpu.memory_space<vmem>>, %arg3: memref<8x256xf32, #tpu.memory_space<vmem>>, %arg4: memref<8x256xf32, #tpu.memory_space<vmem>>, %arg5: memref<8x256xf32, #tpu.memory_space<vmem>>, %arg6: memref<8x1xf32, #tpu.memory_space<vmem>>, %arg7: memref<8x256xf32, #tpu.memory_space<vmem>>) attributes {dimension_semantics = [#tpu.dimension_semantics<parallel>, #tpu.dimension_semantics<arbitrary>], iteration_bounds = array<i64: 1, 1>, scalar_prefetch = 0 : i64, scratch_operands = 1 : i64, tpu.core_type = #tpu.core_type<tc>, window_params = [{transform_indices = @transform_0, window_bounds = array<i64: 8, 256>}, {transform_indices = @transform_1, window_bounds = array<i64: 8, 256>}, {transform_indices = @transform_2, window_bounds = array<i64: 8, 256>}, {transform_indices = @transform_3, window_bounds = array<i64: 8, 256>}, {transform_indices = @transform_4, window_bounds = array<i64: 8, 1>}]} {
    %c0_i32 = arith.constant 0 : i32
    %0 = arith.cmpi eq, %arg1, %c0_i32 : i32
    %1 = arith.extui %0 : i1 to i32
    %c0_i32_0 = arith.constant 0 : i32
    %2 = arith.cmpi ne, %1, %c0_i32_0 : i32
    scf.if %2 {
      %cst_15 = arith.constant 0.000000e+00 : f32
      %25 = vector.broadcast %cst_15 : f32 to vector<8x256xf32>
      %c0_16 = arith.constant 0 : index
      %c0_17 = arith.constant 0 : index
      %26 = vector.load %arg7[%c0_16, %c0_17] : memref<8x256xf32, #tpu.memory_space<vmem>>, vector<8x256xf32>
      tpu.vector_store %arg7[%c0_16, %c0_17], %25 {strides = array<i32>} : memref<8x256xf32, #tpu.memory_space<vmem>>, vector<8x256xf32>,
    } else {
    }
    %c0 = arith.constant 0 : index
    %c0_1 = arith.constant 0 : index
    %3 = vector.load %arg2[%c0, %c0_1] : memref<8x256xf32, #tpu.memory_space<vmem>>, vector<8x256xf32>
    %c0_2 = arith.constant 0 : index
    %c0_3 = arith.constant 0 : index
    %4 = vector.load %arg3[%c0_2, %c0_3] : memref<8x256xf32, #tpu.memory_space<vmem>>, vector<8x256xf32>
    %c0_4 = arith.constant 0 : index
    %c0_5 = arith.constant 0 : index
    %5 = vector.load %arg4[%c0_4, %c0_5] : memref<8x256xf32, #tpu.memory_space<vmem>>, vector<8x256xf32>
    %c0_6 = arith.constant 0 : index
    %c0_7 = arith.constant 0 : index
    %6 = vector.load %arg5[%c0_6, %c0_7] : memref<8x256xf32, #tpu.memory_space<vmem>>, vector<8x256xf32>
    %7 = arith.subf %3, %5 : vector<8x256xf32>
    %8 = math.exp %4 : vector<8x256xf32>
    %9 = arith.mulf %7, %7 : vector<8x256xf32>
    %10 = arith.addf %8, %9 : vector<8x256xf32>
    %cst = arith.constant 0.000000e+00 : f32
    %11 = vector.broadcast %cst : f32 to vector<8x256xf32>
    %12 = arith.subf %11, %6 : vector<8x256xf32>
    %13 = math.exp %12 : vector<8x256xf32>
    %14 = arith.mulf %10, %13 : vector<8x256xf32>
    %15 = arith.subf %6, %4 : vector<8x256xf32>
    %16 = arith.addf %15, %14 : vector<8x256xf32>
    %cst_8 = arith.constant 1.000000e+00 : f32
    %17 = vector.broadcast %cst_8 : f32 to vector<8x256xf32>
    %18 = arith.subf %16, %17 : vector<8x256xf32>
    %c0_9 = arith.constant 0 : index
    %c0_10 = arith.constant 0 : index
    %19 = vector.load %arg7[%c0_9, %c0_10] : memref<8x256xf32, #tpu.memory_space<vmem>>, vector<8x256xf32>
    %20 = arith.addf %19, %18 : vector<8x256xf32>
    %c0_11 = arith.constant 0 : index
    %c0_12 = arith.constant 0 : index
    %21 = vector.load %arg7[%c0_11, %c0_12] : memref<8x256xf32, #tpu.memory_space<vmem>>, vector<8x256xf32>
    tpu.vector_store %arg7[%c0_11, %c0_12], %20 {strides = array<i32>} : memref<8x256xf32, #tpu.memory_space<vmem>>, vector<8x256xf32>,
    %c0_i32_13 = arith.constant 0 : i32
    %22 = arith.cmpi eq, %arg1, %c0_i32_13 : i32
    %23 = arith.extui %22 : i1 to i32
    %c0_i32_14 = arith.constant 0 : i32
    %24 = arith.cmpi ne, %23, %c0_i32_14 : i32
    scf.if %24 {
      %c0_15 = arith.constant 0 : index
      %c0_16 = arith.constant 0 : index
      %25 = vector.load %arg7[%c0_15, %c0_16] : memref<8x256xf32, #tpu.memory_space<vmem>>, vector<8x256xf32>
      %cst_17 = arith.constant dense<0.000000e+00> : vector<8xf32>
      %26 = vector.multi_reduction <add>, %25, %cst_17 [1] : vector<8x256xf32> to vector<8xf32>
      %27 = vector.shape_cast %26 : vector<8xf32> to vector<8x1xf32>
      %c0_18 = arith.constant 0 : index
      %c0_19 = arith.constant 0 : index
      %28 = vector.load %arg6[%c0_18, %c0_19] : memref<8x1xf32, #tpu.memory_space<vmem>>, vector<8x1xf32>
      tpu.vector_store %arg6[%c0_18, %c0_19], %27 {strides = array<i32>} : memref<8x1xf32, #tpu.memory_space<vmem>>, vector<8x1xf32>,
    } else {
    }
    return
  }
  func.func @transform_0(%arg0: i32, %arg1: i32) -> (i32, i32) {
    %c0_i32 = arith.constant 0 : i32
    return %arg0, %arg1 : i32, i32
  }
  func.func @transform_1(%arg0: i32, %arg1: i32) -> (i32, i32) {
    %c0_i32 = arith.constant 0 : i32
    return %arg0, %arg1 : i32, i32
  }
  func.func @transform_2(%arg0: i32, %arg1: i32) -> (i32, i32) {
    %c0_i32 = arith.constant 0 : i32
    return %arg0, %arg1 : i32, i32
  }
  func.func @transform_3(%arg0: i32, %arg1: i32) -> (i32, i32) {
    %c0_i32 = arith.constant 0 : i32
    return %arg0, %arg1 : i32, i32
  }
  func.func @transform_4(%arg0: i32, %arg1: i32) -> (i32, i32) {
    %c0_i32 = arith.constant 0 : i32
    %c0_i32_0 = arith.constant 0 : i32
    return %arg0, %c0_i32 : i32, i32
  }
}

</mosaic_0001>

<bundles_post_ra>
// kernel: tpu_custom_call.1
= control target key start
LH: loop header
LB: loop body
LE: loop exit
PB: predicated region body
PF: predicated region fallthrough
CT: control target
= control target key end

     0   :  { %9 = vsyncpa [#allocation4], 0  ;;  %s313_s0 = inlined_call_operand.hbm [shape: f32[8,256], index: 0, kind: input, shape index: {}]   ;;  %s314_s1 = inlined_call_operand.hbm [shape: f32[8,256], index: 1, kind: input, shape index: {}]   ;;  %s315_s2 = inlined_call_operand.hbm [shape: f32[8,256], index: 2, kind: input, shape index: {}]   ;;  %s316_s3 = inlined_call_operand.hbm [shape: f32[8,256], index: 3, kind: input, shape index: {}]   ;;  %s317_s4 = inlined_call_operand.vmem [shape: f32[8,1], index: 4, kind: output, shape index: {}]  }
   0x1   :  { %10 = vsyncpa [#allocation6], 0 }
   0x2   :  { %11 = vsyncpa [#allocation9], 0  ;;  %s233_s15 = smov [#allocation5]   ;;  %s234_s17 = smov [#allocation3]  }
   0x3   :  { %s28_s16 = sshll.u32 %s233_s15, 4  ;;  %s18_s18 = sshll.u32 %s234_s17, 4  ;;  %s29_s16 = int_to_ptr.vmem [resolvable:$true] %s28_s16  ;;  %s19_s18 = int_to_ptr.vmem [resolvable:$true] %s18_s18 }
   0x4   :  { %s139_s21 = scalar_lea.hbm %s314_s1, 256 }
   0x5   :  { %p140_p0 = scmp.ne.s32.totalorder %s314_s1, %s139_s21  ;;  %p143_p1 = scmp.lt.u32.totalorder %s139_s21, %s314_s1 }
   0x7   :  { %p145_p2 = pnand %p143_p1, %p140_p0 }
   0x9   :  { %148 = shalt.err (!%p145_p2)
}
   0xa   :  { %s149_s26 = scalar_lea.vmem %s29_s16, 256  ;;  %p154_p4 = scmp.lt.s32.totalorder %s29_s16, %s29_s16 }
   0xb   :  { %p150_p3 = scmp.ne.s32.totalorder %s29_s16, %s149_s26  ;;  %p155_p5 = scmp.lt.s32.totalorder %s149_s26, %s149_s26 }
   0xd   :  { %p156_p6 = por %p155_p5, %p154_p4 }
   0xf   :  { %p157_p7 = pnand %p156_p6, %p150_p3 }
  0x11   :  { %160 = shalt.err (!%p157_p7)
}
  0x12   :  { %31 = dma.hbm_to_vmem [thread:$0]  %s314_s1, 256, %s29_s16, [#allocation6]  }
  0x13   :  { %s161_s5 = scalar_lea.hbm %s313_s0, 256 }
  0x14   :  { %p162_p8 = scmp.ne.s32.totalorder %s313_s0, %s161_s5  ;;  %p165_p9 = scmp.lt.u32.totalorder %s161_s5, %s313_s0 }
  0x16   :  { %p167_p10 = pnand %p165_p9, %p162_p8 }
  0x18   :  { %170 = shalt.err (!%p167_p10)
}
  0x19   :  { %s171_s10 = scalar_lea.vmem %s19_s18, 256  ;;  %p176_p12 = scmp.lt.s32.totalorder %s19_s18, %s19_s18 }
  0x1a   :  { %p172_p11 = scmp.ne.s32.totalorder %s19_s18, %s171_s10  ;;  %p177_p13 = scmp.lt.s32.totalorder %s171_s10, %s171_s10 }
  0x1c   :  { %p178_p0 = por %p177_p13, %p176_p12 }
  0x1e   :  { %p179_p1 = pnand %p178_p0, %p172_p11 }
  0x20   :  { %182 = shalt.err (!%p179_p1)
}
  0x21   :  { %21 = dma.hbm_to_vmem [thread:$0]  %s313_s0, 256, %s19_s18, [#allocation4]  }
  0x22   :  { %s235_s12 = smov [#allocation7]   ;;  %s236_s14 = smov [#allocation8]  }
  0x23   :  { %s38_s13 = sshll.u32 %s235_s12, 4  ;;  %s48_s15 = sshll.u32 %s236_s14, 4  ;;  %s39_s13 = int_to_ptr.vmem [resolvable:$true] %s38_s13  ;;  %s49_s15 = int_to_ptr.vmem [resolvable:$true] %s48_s15 }
  0x24   :  { %s183_s19 = scalar_lea.hbm %s315_s2, 256 }
  0x25   :  { %p184_p2 = scmp.ne.s32.totalorder %s315_s2, %s183_s19  ;;  %p187_p3 = scmp.lt.u32.totalorder %s183_s19, %s315_s2 }
  0x27   :  { %p189_p4 = pnand %p187_p3, %p184_p2 }
  0x29   :  { %192 = shalt.err (!%p189_p4)
}
  0x2a   :  { %s193_s0 = scalar_lea.vmem %s39_s13, 256  ;;  %p198_p6 = scmp.lt.s32.totalorder %s39_s13, %s39_s13 }
  0x2b   :  { %p194_p5 = scmp.ne.s32.totalorder %s39_s13, %s193_s0  ;;  %p199_p7 = scmp.lt.s32.totalorder %s193_s0, %s193_s0 }
  0x2d   :  { %p200_p8 = por %p199_p7, %p198_p6 }
  0x2f   :  { %p201_p9 = pnand %p200_p8, %p194_p5 }
  0x31   :  { %204 = shalt.err (!%p201_p9)
}
  0x32   :  { %41 = dma.hbm_to_vmem [thread:$0]  %s315_s2, 256, %s39_s13, [#allocation6]  }
  0x33   :  { %s205_s27 = scalar_lea.hbm %s316_s3, 256 }
  0x34   :  { %p206_p10 = scmp.ne.s32.totalorder %s316_s3, %s205_s27  ;;  %p209_p11 = scmp.lt.u32.totalorder %s205_s27, %s316_s3 }
  0x36   :  { %p211_p12 = pnand %p209_p11, %p206_p10 }
  0x38   :  { %214 = shalt.err (!%p211_p12)
}
  0x39   :  { %s215_s6 = scalar_lea.vmem %s49_s15, 256  ;;  %p220_p0 = scmp.lt.s32.totalorder %s49_s15, %s49_s15 }
  0x3a   :  { %p216_p13 = scmp.ne.s32.totalorder %s49_s15, %s215_s6  ;;  %p221_p1 = scmp.lt.s32.totalorder %s215_s6, %s215_s6 }
  0x3c   :  { %p222_p2 = por %p221_p1, %p220_p0 }
  0x3e   :  { %p223_p3 = pnand %p222_p2, %p216_p13 }
  0x40   :  { %226 = shalt.err (!%p223_p3)
}
  0x41   :  { %51 = dma.hbm_to_vmem [thread:$0]  %s316_s3, 256, %s49_s15, [#allocation9]  }
  0x42   :  { %227 = dma.done.wait [#allocation4], 256  }
  0x43   :  { %228 = vsyncadd [#allocation4], 4294967040 }
  0x44   :  { %229 = dma.done.wait [#allocation6], 512  }
  0x45   :  { %230 = vsyncadd [#allocation6], 4294966784 }
  0x46   :  { %231 = dma.done.wait [#allocation9], 256  }
  0x47   :  { %232 = vsyncadd [#allocation9], 4294967040  ;;  %v72_v0 = vld [vmem:[#allocation5] sm:$0xff]  ;;  %v73_v1 = vld [vmem:[#allocation5 + $0x8] sm:$0xff]  ;;  %vm116_vm0 = vcmask 7168  }
  0x48   :  { %v80_v2 = vmul.f32 1.442695, %v72_v0  ;;  %v76_v3 = vld [vmem:[#allocation8] sm:$0xff]  ;;  %v77_v4 = vld [vmem:[#allocation8 + $0x8] sm:$0xff]  ;;  %v82_v5 = vmul.f32 1.442695, %v73_v1 }
  0x49   :  { %v70_v6 = vld [vmem:[#allocation3] sm:$0xff]  ;;  %v88_v8 = vsub.f32 0.0, %v76_v3  ;;  %v89_v9 = vsub.f32 0.0, %v77_v4  ;;  %v71_v10 = vld [vmem:[#allocation3 + $0x8] sm:$0xff]  ;;  %v96_v22 = vsub.f32 %v76_v3, %v72_v0  ;;  %v97_v24 = vsub.f32 %v77_v4, %v73_v1 }
  0x4a   :  { %v74_v7 = vld [vmem:[#allocation7] sm:$0xff]  ;;  %131 = vpow2.f32 %v80_v2  ;;  %v75_v11 = vld [vmem:[#allocation7 + $0x8] sm:$0xff] }
  0x4b   :  { %133 = vpow2.f32 %v82_v5  ;;  %v90_v12 = vmul.f32 1.442695, %v88_v8  ;;  %v92_v13 = vmul.f32 1.442695, %v89_v9  ;;  %v78_v14 = vsub.f32 %v70_v6, %v74_v7 }
  0x4c   :  { %v79_v15 = vsub.f32 %v71_v10, %v75_v11 }
  0x4d   :  { %135 = vpow2.f32 %v90_v12  ;;  %v84_v16 = vmul.f32 %v78_v14, %v78_v14 }
  0x4e   :  { %137 = vpow2.f32 %v92_v13  ;;  %v85_v17 = vmul.f32 %v79_v15, %v79_v15 }
  0x54   :  { %v132_v18 = vpop.eup %131 }
  0x55   :  { %v134_v19 = vpop.eup %133  ;;  %v86_v20 = vadd.f32 %v132_v18, %v84_v16 }
  0x56   :  { %v87_v21 = vadd.f32 %v134_v19, %v85_v17 }
  0x57   :  { %v136_v23 = vpop.eup %135 }
  0x58   :  { %v138_v25 = vpop.eup %137  ;;  %v94_v26 = vmul.f32 %v136_v23, %v86_v20 }
  0x59   :  { %v95_v27 = vmul.f32 %v138_v25, %v87_v21 }
  0x5a   :  { %v98_v28 = vadd.f32 %v96_v22, %v94_v26 }
  0x5b   :  { %v99_v29 = vadd.f32 %v97_v24, %v95_v27 }
  0x5c   :  { %v125_v30 = vadd.f32 -1.0, %v98_v28 }
  0x5d   :  { %v126_v31 = vadd.f32 -1.0, %v99_v29 }
  0x5f   :  { %v113_v32 = vadd.f32 %v126_v31, %v125_v30 }
  0x61   :  { %114 = vadd.xlane.f32.xlu0 %v113_v32 }
  0xee   :  { %v115_v33 = vpop.xlane.xlu0 %114 }
  0xef   :  { %117 = vst.msk [vmem:[%s317_s4] sm:$0xff] %vm116_vm0, %v115_v33 }
  0xf0   :  { %122 = vsyncpa [#allocation4], 1 }
  0xf1   :  { %123 = vsyncpa [#allocation6], 1 }
  0xf2   :  { %124 = vsyncpa [#allocation9], 1 }

</bundles_post_ra>
